<compile_context>
chip_gen: v5e
topology: v5e:2x2
jax: 0.10.0
libtpu: 0.0.40
codegen_flags: <defaults>
</compile_context>

<pallas_src>
import jax
import jax.numpy as jnp
from jax.experimental import pallas as pl
from jax.experimental.pallas import tpu as pltpu


def _round_up(x, m):
    return ((x + m - 1) // m) * m


# ---------------------------------------------------------------------------
# Kernel 1: fused MLP encoder forward  (x @ W1 + b1 -> ReLU -> @ W2 + b2)
#   - x is tiled over rows (grid axis, "parallel" -> megacore sharding),
#     weights/biases stay VMEM-resident across the grid (block index (0,0)).
#   - MXU operands are cast to bf16 in-kernel (v6e/v7x peak path); accumulation
#     is f32; bias add + ReLU stay f32 on the VPU (v5e has no bf16 VPU).
#   - casting in-kernel (not in the wrapper) keeps the halved-width operands
#     out of HBM traffic accounting only where it matters and avoids an extra
#     un-hidden XLA op before the kernel.
# ---------------------------------------------------------------------------
def _encoder_kernel(x_ref, w1_ref, b1_ref, w2_ref, b2_ref, o_ref):
    x16 = x_ref[...].astype(jnp.bfloat16)
    w116 = w1_ref[...].astype(jnp.bfloat16)
    h = jnp.dot(x16, w116, preferred_element_type=jnp.float32)   # MXU, f32 acc
    h = h + b1_ref[...]                       # (1, F) broadcasts over rows, f32
    h = jnp.maximum(h, 0.0)                   # ReLU on VPU, f32
    w216 = w2_ref[...].astype(jnp.bfloat16)
    y = jnp.dot(h.astype(jnp.bfloat16), w216, preferred_element_type=jnp.float32)
    y = y + b2_ref[...]
    o_ref[...] = y.astype(o_ref.dtype)        # lane-dense store (H % 128 == 0)


def momentum_encoder_forward(x, params, *, tm=512):
    """Forward pass of the (frozen) momentum encoder. x: [B, S, H] float32."""
    B, S, H = x.shape
    w1, b1, w2, b2 = params["w1"], params["b1"], params["w2"], params["b2"]
    F = w1.shape[1]
    assert H % 128 == 0 and F % 128 == 0, "feature dims must be lane-dense (x128)"

    BS = B * S
    x2 = x.reshape(BS, H)
    # TM=512 rows targets ~85% of HBM roofline with double-buffering; shrink to
    # the (8-aligned) actual row count for tiny inputs. On v7x (64 MiB VMEM)
    # or very large H/F, re-derive TM (2 bufs * TM*H*4B per pipelined operand
    # plus resident weights must fit the scoped VMEM limit).
    tm = min(tm, _round_up(BS, 8))
    bs_pad = _round_up(BS, tm)
    if bs_pad != BS:
        x2 = jnp.pad(x2, ((0, bs_pad - BS), (0, 0)))
    grid = (bs_pad // tm,)

    cost = pl.CostEstimate(
        flops=2 * bs_pad * H * F * 2,                       # two matmuls
        transcendentals=0,
        bytes_accessed=4 * (2 * bs_pad * H + 2 * H * F + H + F),
    )

    out = pl.pallas_call(
        _encoder_kernel,
        out_shape=jax.ShapeDtypeStruct((bs_pad, H), x.dtype),
        grid=grid,
        in_specs=[
            pl.BlockSpec((tm, H), lambda i: (i, 0)),   # x row-tile (pipelined)
            pl.BlockSpec((H, F), lambda i: (0, 0)),    # W1 resident
            pl.BlockSpec((1, F), lambda i: (0, 0)),    # b1 resident
            pl.BlockSpec((F, H), lambda i: (0, 0)),    # W2 resident
            pl.BlockSpec((1, H), lambda i: (0, 0)),    # b2 resident
        ],
        out_specs=pl.BlockSpec((tm, H), lambda i: (i, 0)),
        compiler_params=pltpu.CompilerParams(
            dimension_semantics=("parallel",),
        ),
        cost_estimate=cost,
    )(x2, w1, b1, w2, b2)
    return out[:BS].reshape(B, S, H)


# ---------------------------------------------------------------------------
# Kernel 2: fused EMA momentum update over ALL parameter leaves at once.
#   param_k = m * param_k + (1 - m) * param_q
#   - all leaves concatenated into one lane-dense [rows, 1024] buffer,
#   - one pallas_call, row-tiled grid, "parallel" for megacore,
#   - momentum passed as an SMEM scalar (no recompile per momentum value),
#   - param_k buffer aliased to the output (minimum HBM traffic: 2R + 1W).
# ---------------------------------------------------------------------------
def _ema_kernel(m_ref, pk_ref, pq_ref, o_ref):
    m = m_ref[0, 0]
    o_ref[...] = pk_ref[...] * m + pq_ref[...] * (1.0 - m)


def momentum_update(params_k, params_q, momentum=0.999, *, tm=512, lane=1024):
    """Apply the update() rule to every parameter leaf in ONE fused kernel."""
    leaves_k, treedef = jax.tree_util.tree_flatten(params_k)
    leaves_q = jax.tree_util.tree_leaves(params_q)
    shapes = [l.shape for l in leaves_k]
    sizes = [l.size for l in leaves_k]

    flat_k = jnp.concatenate([l.reshape(-1) for l in leaves_k])
    flat_q = jnp.concatenate([l.reshape(-1) for l in leaves_q])
    total = flat_k.size

    rows = pl.cdiv(total, lane)
    tm = min(tm, _round_up(rows, 8))
    rows_pad = _round_up(rows, tm)
    pad = rows_pad * lane - total
    flat_k = jnp.pad(flat_k, (0, pad)).reshape(rows_pad, lane)
    flat_q = jnp.pad(flat_q, (0, pad)).reshape(rows_pad, lane)
    m_arr = jnp.full((1, 1), momentum, dtype=flat_k.dtype)

    out = pl.pallas_call(
        _ema_kernel,
        out_shape=jax.ShapeDtypeStruct((rows_pad, lane), flat_k.dtype),
        grid=(rows_pad // tm,),
        in_specs=[
            pl.BlockSpec(memory_space=pltpu.MemorySpace.SMEM),  # momentum scalar
            pl.BlockSpec((tm, lane), lambda i: (i, 0)),         # param_k tile
            pl.BlockSpec((tm, lane), lambda i: (i, 0)),         # param_q tile
        ],
        out_specs=pl.BlockSpec((tm, lane), lambda i: (i, 0)),
        input_output_aliases={1: 0},                            # write in place
        compiler_params=pltpu.CompilerParams(
            dimension_semantics=("parallel",),
        ),
    )(m_arr, flat_k, flat_q)

    out_flat = out.reshape(-1)
    new_leaves, off = [], 0
    for sz, shp in zip(sizes, shapes):
        new_leaves.append(out_flat[off:off + sz].reshape(shp))
        off += sz
    return jax.tree_util.tree_unflatten(treedef, new_leaves)


# ---------------------------------------------------------------------------
# Deterministic parameter construction (copy.deepcopy(encoder) equivalent)
# ---------------------------------------------------------------------------
def init_encoder_params(key, hidden=128, ffn=256, dtype=jnp.float32):
    k1, k2 = jax.random.split(key)
    w1 = jax.random.normal(k1, (hidden, ffn), dtype) * 0.02
    b1 = jnp.zeros((1, ffn), dtype)
    w2 = jax.random.normal(k2, (ffn, hidden), dtype) * 0.02
    b2 = jnp.zeros((1, hidden), dtype)
    return {"w1": w1, "b1": b1, "w2": w2, "b2": b2}


if __name__ == "__main__":
    key = jax.random.PRNGKey(0)
    k_x, k_q = jax.random.split(key)

    # small batch/seq, lane-dense (multiple-of-128) feature dims
    B, S, H, F = 2, 8, 128, 256
    x = jax.random.normal(k_x, (B, S, H), jnp.float32)

    # query encoder params; momentum (key) encoder is a deep copy at t=0
    params_q = init_encoder_params(k_q, hidden=H, ffn=F)
    params_k = jax.tree_util.tree_map(jnp.copy, params_q)

    # --- forward through the momentum encoder (frozen params) ---
    y = jax.block_until_ready(momentum_encoder_forward(x, params_k))
    assert y.shape == (B, S, H), y.shape

    # reference forward in f32 (kernel uses bf16 MXU operands -> loose tol)
    x2 = x.reshape(B * S, H)
    h_ref = jnp.maximum(x2 @ params_k["w1"] + params_k["b1"], 0.0)
    y_ref = (h_ref @ params_k["w2"] + params_k["b2"]).reshape(B, S, H)
    assert jnp.allclose(y, y_ref, atol=5e-2, rtol=5e-2), float(
        jnp.max(jnp.abs(y - y_ref)))

    # --- simulate one training step drift of the query encoder, EMA update ---
    params_q = jax.tree_util.tree_map(lambda a: a + 0.01, params_q)
    m = 0.999
    params_k_new = jax.block_until_ready(
        momentum_update(params_k, params_q, momentum=m))

    ref_k = jax.tree_util.tree_map(
        lambda pk, pq: pk * m + pq * (1.0 - m), params_k, params_q)
    for got, want in zip(jax.tree_util.tree_leaves(params_k_new),
                         jax.tree_util.tree_leaves(ref_k)):
        assert got.shape == want.shape
        assert jnp.allclose(got, want, atol=1e-7), float(
            jnp.max(jnp.abs(got - want)))

    print("KERNEL_OK")
</pallas_src>

<mosaic_0001>
module attributes {stable_mosaic.version = 11 : i64} {
  func.func @_encoder_kernel(%arg0: i32, %arg1: memref<16x128xf32, #tpu.memory_space<vmem>>, %arg2: memref<128x256xf32, #tpu.memory_space<vmem>>, %arg3: memref<1x256xf32, #tpu.memory_space<vmem>>, %arg4: memref<256x128xf32, #tpu.memory_space<vmem>>, %arg5: memref<1x128xf32, #tpu.memory_space<vmem>>, %arg6: memref<16x128xf32, #tpu.memory_space<vmem>>) attributes {dimension_semantics = [#tpu.dimension_semantics<parallel>], iteration_bounds = array<i64: 1>, scalar_prefetch = 0 : i64, scratch_operands = 0 : i64, tpu.core_type = #tpu.core_type<tc>, window_params = [{transform_indices = @transform_0, window_bounds = array<i64: 16, 128>}, {pipeline_mode = #tpu.pipeline_mode<synchronous>, transform_indices = @transform_1, window_bounds = array<i64: 128, 256>}, {pipeline_mode = #tpu.pipeline_mode<synchronous>, transform_indices = @transform_2, window_bounds = array<i64: 1, 256>}, {pipeline_mode = #tpu.pipeline_mode<synchronous>, transform_indices = @transform_3, window_bounds = array<i64: 256, 128>}, {pipeline_mode = #tpu.pipeline_mode<synchronous>, transform_indices = @transform_4, window_bounds = array<i64: 1, 128>}, {transform_indices = @transform_5, window_bounds = array<i64: 16, 128>}]} {
    %c0 = arith.constant 0 : index
    %c0_0 = arith.constant 0 : index
    %0 = vector.load %arg1[%c0, %c0_0] : memref<16x128xf32, #tpu.memory_space<vmem>>, vector<16x128xf32>
    %1 = arith.truncf %0 : vector<16x128xf32> to vector<16x128xbf16>
    %c0_1 = arith.constant 0 : index
    %c0_2 = arith.constant 0 : index
    %2 = vector.load %arg2[%c0_1, %c0_2] : memref<128x256xf32, #tpu.memory_space<vmem>>, vector<128x256xf32>
    %3 = arith.truncf %2 : vector<128x256xf32> to vector<128x256xbf16>
    %cst = arith.constant dense<0.000000e+00> : vector<16x256xf32>
    %4 = tpu.matmul %1, %3, %cst {dimension_numbers = #tpu.dot_dimension_numbers<[1], [0], [0], [1], [0, 0, 1, 1], [], []>} : vector<16x128xbf16>, vector<128x256xbf16>, vector<16x256xf32> -> vector<16x256xf32>
    %c0_3 = arith.constant 0 : index
    %c0_4 = arith.constant 0 : index
    %5 = vector.load %arg3[%c0_3, %c0_4] : memref<1x256xf32, #tpu.memory_space<vmem>>, vector<1x256xf32>
    %6 = vector.broadcast %5 : vector<1x256xf32> to vector<16x256xf32>
    %7 = arith.addf %4, %6 : vector<16x256xf32>
    %cst_5 = arith.constant 0.000000e+00 : f32
    %8 = vector.broadcast %cst_5 : f32 to vector<16x256xf32>
    %9 = arith.maximumf %7, %8 : vector<16x256xf32>
    %c0_6 = arith.constant 0 : index
    %c0_7 = arith.constant 0 : index
    %10 = vector.load %arg4[%c0_6, %c0_7] : memref<256x128xf32, #tpu.memory_space<vmem>>, vector<256x128xf32>
    %11 = arith.truncf %10 : vector<256x128xf32> to vector<256x128xbf16>
    %12 = arith.truncf %9 : vector<16x256xf32> to vector<16x256xbf16>
    %cst_8 = arith.constant dense<0.000000e+00> : vector<16x128xf32>
    %13 = tpu.matmul %12, %11, %cst_8 {dimension_numbers = #tpu.dot_dimension_numbers<[1], [0], [0], [1], [0, 0, 1, 1], [], []>} : vector<16x256xbf16>, vector<256x128xbf16>, vector<16x128xf32> -> vector<16x128xf32>
    %c0_9 = arith.constant 0 : index
    %c0_10 = arith.constant 0 : index
    %14 = vector.load %arg5[%c0_9, %c0_10] : memref<1x128xf32, #tpu.memory_space<vmem>>, vector<1x128xf32>
    %15 = vector.broadcast %14 : vector<1x128xf32> to vector<16x128xf32>
    %16 = arith.addf %13, %15 : vector<16x128xf32>
    %c0_11 = arith.constant 0 : index
    %c0_12 = arith.constant 0 : index
    %17 = vector.load %arg6[%c0_11, %c0_12] : memref<16x128xf32, #tpu.memory_space<vmem>>, vector<16x128xf32>
    tpu.vector_store %arg6[%c0_11, %c0_12], %16 {strides = array<i32>} : memref<16x128xf32, #tpu.memory_space<vmem>>, vector<16x128xf32>,
    return
  }
  func.func @transform_0(%arg0: i32) -> (i32, i32) {
    %c0_i32 = arith.constant 0 : i32
    %c0_i32_0 = arith.constant 0 : i32
    return %arg0, %c0_i32 : i32, i32
  }
  func.func @transform_1(%arg0: i32) -> (i32, i32) {
    %c0_i32 = arith.constant 0 : i32
    %c0_i32_0 = arith.constant 0 : i32
    %c0_i32_1 = arith.constant 0 : i32
    return %c0_i32, %c0_i32_0 : i32, i32
  }
  func.func @transform_2(%arg0: i32) -> (i32, i32) {
    %c0_i32 = arith.constant 0 : i32
    %c0_i32_0 = arith.constant 0 : i32
    %c0_i32_1 = arith.constant 0 : i32
    return %c0_i32, %c0_i32_0 : i32, i32
  }
  func.func @transform_3(%arg0: i32) -> (i32, i32) {
    %c0_i32 = arith.constant 0 : i32
    %c0_i32_0 = arith.constant 0 : i32
    %c0_i32_1 = arith.constant 0 : i32
    return %c0_i32, %c0_i32_0 : i32, i32
  }
  func.func @transform_4(%arg0: i32) -> (i32, i32) {
    %c0_i32 = arith.constant 0 : i32
    %c0_i32_0 = arith.constant 0 : i32
    %c0_i32_1 = arith.constant 0 : i32
    return %c0_i32, %c0_i32_0 : i32, i32
  }
  func.func @transform_5(%arg0: i32) -> (i32, i32) {
    %c0_i32 = arith.constant 0 : i32
    %c0_i32_0 = arith.constant 0 : i32
    return %arg0, %c0_i32 : i32, i32
  }
}

</mosaic_0001>

<bundles_post_ra>
// kernel: tpu_custom_call.1
= control target key start
LH: loop header
LB: loop body
LE: loop exit
PB: predicated region body
PF: predicated region fallthrough
CT: control target
= control target key end

     0   :  { %10 = vsyncpa [#allocation3], 0  ;;  %s480_s0 = inlined_call_operand.hbm [shape: f32[16,128], index: 0, kind: input, shape index: {}]   ;;  %s481_s1 = inlined_call_operand.hbm [shape: f32[128,256], index: 1, kind: input, shape index: {}]   ;;  %s482_s2 = inlined_call_operand.hbm [shape: f32[1,256], index: 2, kind: input, shape index: {}]   ;;  %s483_s3 = inlined_call_operand.hbm [shape: f32[256,128], index: 3, kind: input, shape index: {}]   ;;  %s484_s4 = inlined_call_operand.vmem [shape: f32[1,128], index: 4, kind: input, shape index: {}]   ;;  %s485_s5 = inlined_call_operand.hbm [shape: f32[16,128], index: 5, kind: output, shape index: {}]  }
   0x1   :  { %11 = vsyncpa [#allocation6], 0 }
   0x2   :  { %12 = vsyncpa [#allocation9], 0  ;;  %s31_s20 = sshll.u32 %s481_s1, 4  ;;  %s32_s20 = int_to_ptr.hbm [resolvable:$true] %s31_s20 }
   0x3   :  { %13 = vsyncpa [#allocation4], 0  ;;  %s414_s21 = smov [#allocation5]   ;;  %s18_s25 = sshll.u32 %s480_s0, 4  ;;  %s19_s25 = int_to_ptr.hbm [resolvable:$true] %s18_s25 }
   0x4   :  { %s33_s22 = sshll.u32 %s414_s21, 4  ;;  %s415_s26 = smov 256   ;;  %s34_s22 = int_to_ptr.vmem [resolvable:$true] %s33_s22 }
   0x5   :  { %s416_s27 = smov 16   ;;  %s417_s28 = smov [#allocation2]  }
   0x6   :  { %39 = dma.hbm_to_vmem [thread:$0]  %s32_s20, 4096, %s34_s22, [#allocation6], %s415_s26, %s415_s26, %s416_s27  }
   0x7   :  { %s20_s29 = sshll.u32 %s417_s28, 4  ;;  %s418_s30 = smov 128   ;;  %s21_s29 = int_to_ptr.vmem [resolvable:$true] %s20_s29 }
   0x8   :  { %s419_s6 = smov 8   ;;  %s45_s8 = sshll.u32 %s482_s2, 4  ;;  %s46_s8 = int_to_ptr.hbm [resolvable:$true] %s45_s8 }
   0x9   :  { %26 = dma.hbm_to_vmem [thread:$0]  %s19_s25, 256, %s21_s29, [#allocation3], %s418_s30, %s418_s30, %s419_s6  }
   0xa   :  { %s420_s9 = smov [#allocation7]   ;;  %s55_s12 = sshll.u32 %s483_s3, 4  ;;  %s56_s12 = int_to_ptr.hbm [resolvable:$true] %s55_s12 }
   0xb   :  { %s47_s0 = sshll.u32 %s420_s9, 4  ;;  %s421_s13 = smov [#allocation8]   ;;  %s48_s0 = int_to_ptr.vmem [resolvable:$true] %s47_s0 }
   0xc   :  { %50 = dma.hbm_to_vmem [thread:$0]  %s46_s8, 32, %s48_s0, [#allocation6]  }
   0xd   :  { %s57_s14 = sshll.u32 %s421_s13, 4  ;;  %s58_s14 = int_to_ptr.vmem [resolvable:$true] %s57_s14 }
   0xe   :  { %63 = dma.hbm_to_vmem [thread:$0]  %s56_s12, 4096, %s58_s14, [#allocation9], %s418_s30, %s418_s30, %s419_s6  }
   0xf   :  { %406 = dma.done.wait [#allocation3], 256  }
  0x10   :  { %407 = vsyncadd [#allocation3], 4294967040 }
  0x11   :  { %408 = dma.done.wait [#allocation6], 4128  }
  0x12   :  { %409 = vsyncadd [#allocation6], 4294963168 }
  0x13   :  { %410 = dma.done.wait [#allocation9], 4096  }
  0x14   :  { %411 = vsyncadd [#allocation9], 4294963200  ;;  %v113_v0 = vld [vmem:[#allocation5 + $0xe0] sm:$0xff]  ;;  %v115_v1 = vld [vmem:[#allocation5 + $0xf0] sm:$0xff]  ;;  %s422_s15 = smov [#allocation10]   ;;  %s261_s19 = sshll.u32 %s485_s5, 4  ;;  %s262_s19 = int_to_ptr.hbm [resolvable:$true] %s261_s19 }
  0x15   :  { %v114_v2 = vld [vmem:[#allocation5 + $0xe8] sm:$0xff]  ;;  %v131_v3 = vpack.c.bf16 %v115_v1, %v113_v0  ;;  %v116_v4 = vld [vmem:[#allocation5 + $0xf8] sm:$0xff]  ;;  %v109_v5 = vld [vmem:[#allocation5 + $0xc0] sm:$0xff]  ;;  %s259_s16 = sshll.u32 %s422_s15, 4  ;;  %s260_s16 = int_to_ptr.vmem [resolvable:$true] %s259_s16 }
  0x16   :  { %v111_v6 = vld [vmem:[#allocation5 + $0xd0] sm:$0xff]  ;;  %v132_v7 = vpack.c.bf16 %v116_v4, %v114_v2  ;;  %v110_v8 = vld [vmem:[#allocation5 + $0xc8] sm:$0xff]  ;;  %v112_v9 = vld [vmem:[#allocation5 + $0xd8] sm:$0xff] }
  0x17   :  { %139 = vmatpush.bf16.msra.mxu0 %v131_v3  ;;  %v129_v10 = vpack.c.bf16 %v111_v6, %v109_v5  ;;  %v130_v11 = vpack.c.bf16 %v112_v9, %v110_v8  ;;  %v105_v12 = vld [vmem:[#allocation5 + $0xa0] sm:$0xff]  ;;  %v107_v13 = vld [vmem:[#allocation5 + $0xb0] sm:$0xff]  ;;  %v106_v14 = vld [vmem:[#allocation5 + $0xa8] sm:$0xff] }
  0x18   :  { %153 = vmatpush.bf16.msra.mxu1 %v132_v7  ;;  %v108_v15 = vld [vmem:[#allocation5 + $0xb8] sm:$0xff]  ;;  %v127_v16 = vpack.c.bf16 %v107_v13, %v105_v12  ;;  %v101_v18 = vld [vmem:[#allocation5 + $0x80] sm:$0xff]  ;;  %v103_v19 = vld [vmem:[#allocation5 + $0x90] sm:$0xff] }
  0x19   :  { %v128_v17 = vpack.c.bf16 %v108_v15, %v106_v14  ;;  %v102_v20 = vld [vmem:[#allocation5 + $0x88] sm:$0xff]  ;;  %v104_v21 = vld [vmem:[#allocation5 + $0x98] sm:$0xff]  ;;  %v97_v22 = vld [vmem:[#allocation5 + $0x60] sm:$0xff]  ;;  %v125_v24 = vpack.c.bf16 %v103_v19, %v101_v18 }
  0x1a   :  { %v99_v23 = vld [vmem:[#allocation5 + $0x70] sm:$0xff]  ;;  %v98_v25 = vld [vmem:[#allocation5 + $0x68] sm:$0xff]  ;;  %v100_v26 = vld [vmem:[#allocation5 + $0x78] sm:$0xff]  ;;  %v126_v29 = vpack.c.bf16 %v104_v21, %v102_v20 }
  0x1b   :  { %140 = vmatpush.bf16.msra.mxu0 %v129_v10  ;;  %v185_v27 = vld [vmem:[#allocation8 + $0x70] sm:$0xff]  ;;  %v186_v28 = vld [vmem:[#allocation8 + $0x78] sm:$0xff]  ;;  %v183_v33 = vld [vmem:[#allocation8 + $0x60] sm:$0xff]  ;;  %v123_v39 = vpack.c.bf16 %v99_v23, %v97_v22  ;;  %v124_v44 = vpack.c.bf16 %v100_v26, %v98_v25 }
  0x1c   :  { %154 = vmatpush.bf16.msra.mxu1 %v130_v11  ;;  %v210_v30 = vpack.c.bf16 %v186_v28, %v185_v27  ;;  %v201_v31 = vld [vmem:[#allocation8 + $0xf0] sm:$0xff]  ;;  %v202_v32 = vld [vmem:[#allocation8 + $0xf8] sm:$0xff]  ;;  %v184_v35 = vld [vmem:[#allocation8 + $0x68] sm:$0xff] }
  0x1d   :  { %v218_v34 = vpack.c.bf16 %v202_v32, %v201_v31  ;;  %v199_v36 = vld [vmem:[#allocation8 + $0xe0] sm:$0xff]  ;;  %v200_v37 = vld [vmem:[#allocation8 + $0xe8] sm:$0xff]  ;;  %v209_v38 = vpack.c.bf16 %v184_v35, %v183_v33  ;;  %v181_v42 = vld [vmem:[#allocation8 + $0x50] sm:$0xff] }
  0x1e   :  { %225 = vmatpush.bf16.msra.mxu2 %v210_v30  ;;  %v93_v40 = vld [vmem:[#allocation5 + $0x40] sm:$0xff]  ;;  %v217_v41 = vpack.c.bf16 %v200_v37, %v199_v36  ;;  %v95_v45 = vld [vmem:[#allocation5 + $0x50] sm:$0xff]  ;;  %v94_v48 = vld [vmem:[#allocation5 + $0x48] sm:$0xff] }
  0x1f   :  { %141 = vmatpush.bf16.msra.mxu0 %v127_v16  ;;  %239 = vmatpush.bf16.msra.mxu3 %v218_v34  ;;  %v182_v43 = vld [vmem:[#allocation8 + $0x58] sm:$0xff]  ;;  %v197_v46 = vld [vmem:[#allocation8 + $0xd0] sm:$0xff]  ;;  %v121_v51 = vpack.c.bf16 %v95_v45, %v93_v40  ;;  %v179_v54 = vld [vmem:[#allocation8 + $0x40] sm:$0xff] }
  0x20   :  { %155 = vmatpush.bf16.msra.mxu1 %v128_v17  ;;  %v198_v47 = vld [vmem:[#allocation8 + $0xd8] sm:$0xff]  ;;  %v208_v50 = vpack.c.bf16 %v182_v43, %v181_v42  ;;  %v180_v55 = vld [vmem:[#allocation8 + $0x48] sm:$0xff]  ;;  %v195_v58 = vld [vmem:[#allocation8 + $0xc0] sm:$0xff] }
  0x21   :  { %v96_v49 = vld [vmem:[#allocation5 + $0x58] sm:$0xff]  ;;  %v89_v52 = vld [vmem:[#allocation5 + $0x20] sm:$0xff]  ;;  %v216_v53 = vpack.c.bf16 %v198_v47, %v197_v46  ;;  %v91_v57 = vld [vmem:[#allocation5 + $0x30] sm:$0xff]  ;;  %v207_v62 = vpack.c.bf16 %v180_v55, %v179_v54 }
  0x22   :  { %226 = vmatpush.bf16.msra.mxu2 %v209_v38  ;;  %v122_v56 = vpack.c.bf16 %v96_v49, %v94_v48  ;;  %v196_v59 = vld [vmem:[#allocation8 + $0xc8] sm:$0xff]  ;;  %v92_v61 = vld [vmem:[#allocation5 + $0x38] sm:$0xff]  ;;  %v119_v63 = vpack.c.bf16 %v91_v57, %v89_v52  ;;  %v85_v2 = vld [vmem:[#allocation5] sm:$0xff] }
  0x23   :  { %142 = vmatpush.bf16.msra.mxu0 %v125_v24  ;;  %240 = vmatpush.bf16.msra.mxu3 %v217_v41  ;;  %v90_v60 = vld [vmem:[#allocation5 + $0x28] sm:$0xff]  ;;  %v215_v0 = vpack.c.bf16 %v196_v59, %v195_v58  ;;  %v87_v3 = vld [vmem:[#allocation5 + $0x10] sm:$0xff]  ;;  %v88_v5 = vld [vmem:[#allocation5 + $0x18] sm:$0xff] }
  0x24   :  { %156 = vmatpush.bf16.msra.mxu1 %v126_v29  ;;  %v120_v1 = vpack.c.bf16 %v92_v61, %v90_v60  ;;  %v86_v4 = vld [vmem:[#allocation5 + $0x8] sm:$0xff]  ;;  %v117_v6 = vpack.c.bf16 %v87_v3, %v85_v2  ;;  %v82_v7 = vld [vmem:[#allocation2] sm:$0xff]  ;;  %v83_v8 = vld [vmem:[#allocation2 + $0x8] sm:$0xff] }
  0x25   :  { %v118_v9 = vpack.c.bf16 %v88_v5, %v86_v4  ;;  %v84_v10 = vpack.c.bf16 %v83_v8, %v82_v7  ;;  %v177_v11 = vld [vmem:[#allocation8 + $0x30] sm:$0xff]  ;;  %v178_v12 = vld [vmem:[#allocation8 + $0x38] sm:$0xff]  ;;  %v175_v17 = vld [vmem:[#allocation8 + $0x20] sm:$0xff] }
  0x26   :  { %227 = vmatpush.bf16.msra.mxu2 %v208_v50  ;;  %v193_v13 = vld [vmem:[#allocation8 + $0xb0] sm:$0xff]  ;;  %v206_v14 = vpack.c.bf16 %v178_v12, %v177_v11  ;;  %v194_v15 = vld [vmem:[#allocation8 + $0xb8] sm:$0xff]  ;;  %v176_v18 = vld [vmem:[#allocation8 + $0x28] sm:$0xff] }
  0x27   :  { %143 = vmatpush.bf16.msra.mxu0 %v123_v39  ;;  %241 = vmatpush.bf16.msra.mxu3 %v216_v53  ;;  %v214_v16 = vpack.c.bf16 %v194_v15, %v193_v13  ;;  %v191_v19 = vld [vmem:[#allocation8 + $0xa0] sm:$0xff]  ;;  %v205_v20 = vpack.c.bf16 %v176_v18, %v175_v17  ;;  %v192_v21 = vld [vmem:[#allocation8 + $0xa8] sm:$0xff]  ;;  %v173_v23 = vld [vmem:[#allocation8 + $0x10] sm:$0xff] }
  0x28   :  { %157 = vmatpush.bf16.msra.mxu1 %v124_v44  ;;  %v213_v22 = vpack.c.bf16 %v192_v21, %v191_v19  ;;  %v174_v24 = vld [vmem:[#allocation8 + $0x18] sm:$0xff]  ;;  %v189_v25 = vld [vmem:[#allocation8 + $0x90] sm:$0xff]  ;;  %v171_v29 = vld [vmem:[#allocation8] sm:$0xff] }
  0x29   :  { %v204_v26 = vpack.c.bf16 %v174_v24, %v173_v23  ;;  %v190_v27 = vld [vmem:[#allocation8 + $0x98] sm:$0xff]  ;;  %v172_v30 = vld [vmem:[#allocation8 + $0x8] sm:$0xff]  ;;  %v187_v31 = vld [vmem:[#allocation8 + $0x80] sm:$0xff] }
  0x2a   :  { %228 = vmatpush.bf16.msra.mxu2 %v207_v62  ;;  %v212_v28 = vpack.c.bf16 %v190_v27, %v189_v25  ;;  %v203_v32 = vpack.c.bf16 %v172_v30, %v171_v29  ;;  %v188_v33 = vld [vmem:[#allocation8 + $0x88] sm:$0xff]  ;;  %v133_v35 = vld [vmem:[#allocation7] sm:$0x3] }
  0x2b   :  { %144 = vmatpush.bf16.msra.mxu0 %v121_v51  ;;  %242 = vmatpush.bf16.msra.mxu3 %v215_v0  ;;  %v211_v34 = vpack.c.bf16 %v188_v33, %v187_v31  ;;  %v135_v38 = vperm.slane %v133_v35, 0  ;;  %v136_v39 = vperm.slane %v133_v35, 1  ;;  %v285_v52 = vld [vmem:[%s484_s4] ss:$0 sm:$0xff] }
  0x2c   :  { %158 = vmatpush.bf16.msra.mxu1 %v122_v56 }
  0x2e   :  { %229 = vmatpush.bf16.msra.mxu2 %v206_v14 }
  0x2f   :  { %145 = vmatpush.bf16.msra.mxu0 %v119_v63  ;;  %243 = vmatpush.bf16.msra.mxu3 %v214_v16 }
  0x30   :  { %159 = vmatpush.bf16.msra.mxu1 %v120_v1 }
  0x32   :  { %230 = vmatpush.bf16.msra.mxu2 %v205_v20 }
  0x33   :  { %146 = vmatpush.bf16.msra.mxu0 %v117_v6  ;;  %244 = vmatpush.bf16.msra.mxu3 %v213_v22 }
  0x34   :  { %160 = vmatpush.bf16.msra.mxu1 %v118_v9 }
  0x36   :  { %147 = vmatmul.bf16.vlgmr.msra.gmra.mxu0 %v84_v10  ;;  %231 = vmatpush.bf16.msra.mxu2 %v204_v26 }
  0x37   :  { %161 = vmatmul.bf16.vlgmr.msra.gmra.mxu1 %v84_v10  ;;  %245 = vmatpush.bf16.msra.mxu3 %v212_v28 }
  0x3a   :  { %232 = vmatpush.bf16.msra.mxu2 %v203_v32 }
  0x3b   :  { %246 = vmatpush.bf16.msra.mxu3 %v211_v34 }
  0xb3   :  { %v148_v36 = vpop.f32.mrf.mxu0 }
  0xb4   :  { %v162_v37 = vpop.f32.mrf.mxu1  ;;  %v149_v40 = vadd.f32 %v148_v36, %v135_v38 }
  0xb5   :  { %v163_v41 = vadd.f32 %v162_v37, %v136_v39 }
  0xb6   :  { %v167_v46 = vmax.f32 %v149_v40, 0.0 }
  0xb7   :  { %v168_v48 = vmax.f32 %v163_v41, 0.0 }
  0xbb   :  { %v150_v42 = vpop.f32.mrf.mxu0 }
  0xbc   :  { %v151_v43 = vadd.f32 %v150_v42, %v135_v38  ;;  %v164_v44 = vpop.f32.mrf.mxu1 }
  0xbd   :  { %v165_v45 = vadd.f32 %v164_v44, %v136_v39 }
  0xbe   :  { %v169_v47 = vmax.f32 %v151_v43, 0.0 }
  0xbf   :  { %v170_v49 = vmax.f32 %v165_v45, 0.0 }
  0xc0   :  { %v219_v50 = vpack.c.bf16 %v169_v47, %v167_v46 }
  0xc1   :  { %v220_v51 = vpack.c.bf16 %v170_v49, %v168_v48 }
  0xc2   :  { %233 = vmatmul.bf16.vlgmr.msra.gmra.mxu2 %v219_v50 }
  0xc3   :  { %247 = vmatmul.bf16.vlgmr.msra.gmra.mxu3 %v220_v51 }
 0x145   :  { %v234_v53 = vpop.f32.mrf.mxu2 }
 0x146   :  { %v235_v54 = vadd.f32 %v285_v52, %v234_v53  ;;  %v248_v55 = vpop.f32.mrf.mxu3 }
 0x148   :  { %v249_v56 = vadd.f32 %v248_v55, %v235_v54 }
 0x14a   :  { %253 = vst [vmem:[#allocation10] sm:$0xff] %v249_v56 }
 0x14d   :  { %v236_v57 = vpop.f32.mrf.mxu2 }
 0x14e   :  { %v237_v58 = vadd.f32 %v285_v52, %v236_v57  ;;  %v250_v59 = vpop.f32.mrf.mxu3 }
 0x150   :  { %v251_v60 = vadd.f32 %v250_v59, %v237_v58 }
 0x152   :  { %254 = vst [vmem:[#allocation10 + $0x8] sm:$0xff] %v251_v60 }
 0x153   :  { %267 = dma.vmem_to_hbm [thread:$0]  %s260_s16, 256, %s262_s19, [#allocation4], %s418_s30, %s418_s30, %s419_s6  }
 0x154   :  { %412 = dma.done.wait [#allocation4], 256  }
 0x155   :  { %413 = vsyncadd [#allocation4], 4294967040 }
 0x156   :  { %272 = vsyncpa [#allocation3], 1 }
 0x157   :  { %273 = vsyncpa [#allocation6], 1 }
 0x158   :  { %274 = vsyncpa [#allocation9], 1 }
 0x159   :  { %275 = vsyncpa [#allocation4], 1 }

</bundles_post_ra>
